<compile_context>
chip_gen: v6e
topology: v6e:2x2x1
jax: 0.10.0
libtpu: 0.0.40
codegen_flags: <defaults>
</compile_context>

<pallas_src>
import math

import jax
import jax.numpy as jnp
from jax.experimental import pallas as pl
from jax.experimental.pallas import tpu as pltpu


def _lstm_soft_att_kernel(att_ref, attT_ref, h_ref,
                          wa_ref, ba_ref, whT_ref, bh_ref, wd_ref, bd_ref,
                          o_ref):
    """One batch element per grid step; everything stays in VMEM / vregs.

    Shapes (A = att_size, R = rnn_size):
      att_ref  (A, R)  attention slots for this batch element
      attT_ref (R, A)  same data, pre-transposed in the wrapper (free XLA op)
      h_ref    (1, R)  prev_h row
      wa_ref   (A, R)  a2a.weight (PyTorch (out,in) layout used directly as LHS)
      ba_ref   (A, 1)  a2a.bias as a column
      whT_ref  (R, A)  h2a.weight pre-transposed to (in,out)
      bh_ref   (1, A)  h2a.bias as a row
      wd_ref   (1, A)  d2d.weight
      bd_ref   (1, 1)  d2d.bias
      o_ref    (1, R)  pooled attention result
    """
    f32 = jnp.float32
    # a2a in transposed orientation: av_t[j, i] = sum_r Wa[j, r] * att[i, r] + ba[j]
    av_t = jnp.dot(wa_ref[...], attT_ref[...], preferred_element_type=f32) + ba_ref[...]
    # h2a: ah[0, i] = sum_r h[0, r] * WhT[r, i] + bh[i]
    ah = jnp.dot(h_ref[...], whT_ref[...], preferred_element_type=f32) + bh_ref[...]
    # dot_t[j, i] = tanh(av[i, j] + ah[i])   (sublane-broadcast of the (1, A) row)
    dot_t = jnp.tanh(av_t + ah)
    # d2d: d[0, i] = sum_j Wd[0, j] * dot_t[j, i] + bd
    d = jnp.dot(wd_ref[...], dot_t, preferred_element_type=f32) + bd_ref[...]
    # softmax over attention slots i (lane axis)  -- matches F.softmax(dim=1)
    m = jnp.max(d, axis=-1, keepdims=True)
    e = jnp.exp(d - m)
    w = e / jnp.sum(e, axis=-1, keepdims=True)
    # pooled result: res[0, r] = sum_i w[0, i] * att[i, r]   (== bmm(att^T, w))
    o_ref[...] = jnp.dot(w, att_ref[...], preferred_element_type=f32).astype(o_ref.dtype)


def lstm_soft_att_forward(att, prev_h, params):
    """att: (B, A, R) f32, prev_h: (B, R) f32  ->  (B, R) f32."""
    wa, ba = params["a2a"]    # (A, R), (A,)
    wh, bh = params["h2a"]    # (A, R), (A,)
    wd, bd = params["d2d"]    # (1, A), (1,)
    B, A, R = att.shape

    att = att.astype(jnp.float32)
    attT = jnp.transpose(att, (0, 2, 1))                 # (B, R, A), wrapper-side
    h3 = prev_h.astype(jnp.float32).reshape(B, 1, R)     # keep 2-D tiles in-kernel

    out = pl.pallas_call(
        _lstm_soft_att_kernel,
        out_shape=jax.ShapeDtypeStruct((B, 1, R), jnp.float32),
        grid=(B,),
        in_specs=[
            pl.BlockSpec((None, A, R), lambda b: (b, 0, 0)),   # att
            pl.BlockSpec((None, R, A), lambda b: (b, 0, 0)),   # att^T
            pl.BlockSpec((None, 1, R), lambda b: (b, 0, 0)),   # prev_h
            pl.BlockSpec((A, R), lambda b: (0, 0)),            # a2a.weight (resident)
            pl.BlockSpec((A, 1), lambda b: (0, 0)),            # a2a.bias
            pl.BlockSpec((R, A), lambda b: (0, 0)),            # h2a.weight^T (resident)
            pl.BlockSpec((1, A), lambda b: (0, 0)),            # h2a.bias
            pl.BlockSpec((1, A), lambda b: (0, 0)),            # d2d.weight
            pl.BlockSpec((1, 1), lambda b: (0, 0)),            # d2d.bias
        ],
        out_specs=pl.BlockSpec((None, 1, R), lambda b: (b, 0, 0)),
        compiler_params=pltpu.CompilerParams(
            dimension_semantics=("parallel",)),
    )(att, attT, h3,
      wa.astype(jnp.float32),
      ba.astype(jnp.float32).reshape(A, 1),
      wh.astype(jnp.float32).T,
      bh.astype(jnp.float32).reshape(1, A),
      wd.astype(jnp.float32).reshape(1, A),
      bd.astype(jnp.float32).reshape(1, 1))
    return out.reshape(B, R)


# ---------------------------------------------------------------------------
# Pure-JAX reference (verification only) -- mirrors the PyTorch forward.
# ---------------------------------------------------------------------------
def reference_forward(att, prev_h, params):
    wa, ba = params["a2a"]
    wh, bh = params["h2a"]
    wd, bd = params["d2d"]
    B, A, R = att.shape
    att_v = (att.reshape(-1, R) @ wa.T + ba).reshape(B, A, A)
    att_h = prev_h @ wh.T + bh                      # (B, A)
    dot = jnp.tanh(att_v + att_h[:, :, None])       # (B, A, A)
    d = (dot.reshape(-1, A) @ wd.T + bd).reshape(B, A)
    w = jax.nn.softmax(d, axis=1)                   # F.softmax default dim=1 for 2-D
    return jnp.einsum("bar,ba->br", att, w)         # bmm(att^T, w)


# ---------------------------------------------------------------------------
# Deterministic parameter initialization (shapes from __init__)
# ---------------------------------------------------------------------------
def init_params(key, rnn_size, att_size):
    def lin(k, out_dim, in_dim):
        kw, kb = jax.random.split(k)
        w = jax.random.normal(kw, (out_dim, in_dim), jnp.float32) / math.sqrt(in_dim)
        b = jax.random.normal(kb, (out_dim,), jnp.float32) * 0.05
        return w, b

    k1, k2, k3 = jax.random.split(key, 3)
    return {
        "a2a": lin(k1, att_size, rnn_size),
        "h2a": lin(k2, att_size, rnn_size),
        "d2d": lin(k3, 1, att_size),
    }


if __name__ == "__main__":
    rnn_size, att_size, batch = 32, 16, 2

    key = jax.random.PRNGKey(0)
    k_par, k_att, k_h = jax.random.split(key, 3)
    params = init_params(k_par, rnn_size, att_size)

    att = jax.random.normal(k_att, (batch, att_size, rnn_size), jnp.float32)
    prev_h = jax.random.normal(k_h, (batch, rnn_size), jnp.float32)

    out = lstm_soft_att_forward(att, prev_h, params)
    out = jax.block_until_ready(out)

    ref = reference_forward(att, prev_h, params)
    assert out.shape == (batch, rnn_size)
    assert jnp.allclose(out, ref, rtol=1e-3, atol=1e-3), (
        f"mismatch: max abs err {jnp.max(jnp.abs(out - ref))}")

    print("KERNEL_OK")
</pallas_src>

<mosaic_0001>
module attributes {stable_mosaic.version = 11 : i64} {
  func.func @_lstm_soft_att_kernel(%arg0: i32, %arg1: memref<1x16x32xf32, #tpu.memory_space<vmem>>, %arg2: memref<1x32x16xf32, #tpu.memory_space<vmem>>, %arg3: memref<1x1x32xf32, #tpu.memory_space<vmem>>, %arg4: memref<16x32xf32, #tpu.memory_space<vmem>>, %arg5: memref<16x1xf32, #tpu.memory_space<vmem>>, %arg6: memref<32x16xf32, #tpu.memory_space<vmem>>, %arg7: memref<1x16xf32, #tpu.memory_space<vmem>>, %arg8: memref<1x16xf32, #tpu.memory_space<vmem>>, %arg9: memref<1x1xf32, #tpu.memory_space<vmem>>, %arg10: memref<1x1x32xf32, #tpu.memory_space<vmem>>) attributes {dimension_semantics = [#tpu.dimension_semantics<parallel>], iteration_bounds = array<i64: 2>, scalar_prefetch = 0 : i64, scratch_operands = 0 : i64, tpu.core_type = #tpu.core_type<tc>, window_params = [{transform_indices = @transform_0, window_bounds = array<i64: 1, 16, 32>}, {transform_indices = @transform_1, window_bounds = array<i64: 1, 32, 16>}, {transform_indices = @transform_2, window_bounds = array<i64: 1, 1, 32>}, {pipeline_mode = #tpu.pipeline_mode<synchronous>, transform_indices = @transform_3, window_bounds = array<i64: 16, 32>}, {pipeline_mode = #tpu.pipeline_mode<synchronous>, transform_indices = @transform_4, window_bounds = array<i64: 16, 1>}, {pipeline_mode = #tpu.pipeline_mode<synchronous>, transform_indices = @transform_5, window_bounds = array<i64: 32, 16>}, {pipeline_mode = #tpu.pipeline_mode<synchronous>, transform_indices = @transform_6, window_bounds = array<i64: 1, 16>}, {pipeline_mode = #tpu.pipeline_mode<synchronous>, transform_indices = @transform_7, window_bounds = array<i64: 1, 16>}, {pipeline_mode = #tpu.pipeline_mode<synchronous>, transform_indices = @transform_8, window_bounds = array<i64: 1, 1>}, {transform_indices = @transform_9, window_bounds = array<i64: 1, 1, 32>}]} {
    %c0 = arith.constant 0 : index
    %c0_0 = arith.constant 0 : index
    %0 = vector.load %arg4[%c0, %c0_0] : memref<16x32xf32, #tpu.memory_space<vmem>>, vector<16x32xf32>
    %c0_1 = arith.constant 0 : index
    %c0_2 = arith.constant 0 : index
    %c0_3 = arith.constant 0 : index
    %1 = vector.load %arg2[%c0_1, %c0_2, %c0_3] : memref<1x32x16xf32, #tpu.memory_space<vmem>>, vector<1x32x16xf32>
    %2 = vector.shape_cast %1 : vector<1x32x16xf32> to vector<32x16xf32>
    %cst = arith.constant dense<0.000000e+00> : vector<16x16xf32>
    %3 = tpu.matmul %0, %2, %cst {dimension_numbers = #tpu.dot_dimension_numbers<[1], [0], [0], [1], [0, 0, 1, 1], [], []>} : vector<16x32xf32>, vector<32x16xf32>, vector<16x16xf32> -> vector<16x16xf32>
    %c0_4 = arith.constant 0 : index
    %c0_5 = arith.constant 0 : index
    %4 = vector.load %arg5[%c0_4, %c0_5] : memref<16x1xf32, #tpu.memory_space<vmem>>, vector<16x1xf32>
    %5 = vector.broadcast %4 : vector<16x1xf32> to vector<16x16xf32>
    %6 = arith.addf %3, %5 : vector<16x16xf32>
    %c0_6 = arith.constant 0 : index
    %c0_7 = arith.constant 0 : index
    %c0_8 = arith.constant 0 : index
    %7 = vector.load %arg3[%c0_6, %c0_7, %c0_8] : memref<1x1x32xf32, #tpu.memory_space<vmem>>, vector<1x1x32xf32>
    %8 = vector.shape_cast %7 : vector<1x1x32xf32> to vector<1x32xf32>
    %c0_9 = arith.constant 0 : index
    %c0_10 = arith.constant 0 : index
    %9 = vector.load %arg6[%c0_9, %c0_10] : memref<32x16xf32, #tpu.memory_space<vmem>>, vector<32x16xf32>
    %cst_11 = arith.constant dense<0.000000e+00> : vector<1x16xf32>
    %10 = tpu.matmul %8, %9, %cst_11 {dimension_numbers = #tpu.dot_dimension_numbers<[1], [0], [0], [1], [0, 0, 1, 1], [], []>} : vector<1x32xf32>, vector<32x16xf32>, vector<1x16xf32> -> vector<1x16xf32>
    %c0_12 = arith.constant 0 : index
    %c0_13 = arith.constant 0 : index
    %11 = vector.load %arg7[%c0_12, %c0_13] : memref<1x16xf32, #tpu.memory_space<vmem>>, vector<1x16xf32>
    %12 = arith.addf %10, %11 : vector<1x16xf32>
    %13 = vector.broadcast %12 : vector<1x16xf32> to vector<16x16xf32>
    %14 = arith.addf %6, %13 : vector<16x16xf32>
    %15 = math.tanh %14 : vector<16x16xf32>
    %c0_14 = arith.constant 0 : index
    %c0_15 = arith.constant 0 : index
    %16 = vector.load %arg8[%c0_14, %c0_15] : memref<1x16xf32, #tpu.memory_space<vmem>>, vector<1x16xf32>
    %cst_16 = arith.constant dense<0.000000e+00> : vector<1x16xf32>
    %17 = tpu.matmul %16, %15, %cst_16 {dimension_numbers = #tpu.dot_dimension_numbers<[1], [0], [0], [1], [0, 0, 1, 1], [], []>} : vector<1x16xf32>, vector<16x16xf32>, vector<1x16xf32> -> vector<1x16xf32>
    %c0_17 = arith.constant 0 : index
    %c0_18 = arith.constant 0 : index
    %18 = vector.load %arg9[%c0_17, %c0_18] : memref<1x1xf32, #tpu.memory_space<vmem>>, vector<1x1xf32>
    %19 = vector.broadcast %18 : vector<1x1xf32> to vector<1x16xf32>
    %20 = arith.addf %17, %19 : vector<1x16xf32>
    %cst_19 = arith.constant dense<0xFF800000> : vector<1xf32>
    %21 = vector.multi_reduction <maximumf>, %20, %cst_19 [1] : vector<1x16xf32> to vector<1xf32>
    %22 = vector.shape_cast %21 : vector<1xf32> to vector<1x1xf32>
    %23 = vector.broadcast %22 : vector<1x1xf32> to vector<1x16xf32>
    %24 = arith.subf %20, %23 : vector<1x16xf32>
    %25 = math.exp %24 : vector<1x16xf32>
    %cst_20 = arith.constant dense<0.000000e+00> : vector<1xf32>
    %26 = vector.multi_reduction <add>, %25, %cst_20 [1] : vector<1x16xf32> to vector<1xf32>
    %27 = vector.shape_cast %26 : vector<1xf32> to vector<1x1xf32>
    %28 = vector.broadcast %27 : vector<1x1xf32> to vector<1x16xf32>
    %29 = arith.divf %25, %28 : vector<1x16xf32>
    %c0_21 = arith.constant 0 : index
    %c0_22 = arith.constant 0 : index
    %c0_23 = arith.constant 0 : index
    %30 = vector.load %arg1[%c0_21, %c0_22, %c0_23] : memref<1x16x32xf32, #tpu.memory_space<vmem>>, vector<1x16x32xf32>
    %31 = vector.shape_cast %30 : vector<1x16x32xf32> to vector<16x32xf32>
    %cst_24 = arith.constant dense<0.000000e+00> : vector<1x32xf32>
    %32 = tpu.matmul %29, %31, %cst_24 {dimension_numbers = #tpu.dot_dimension_numbers<[1], [0], [0], [1], [0, 0, 1, 1], [], []>} : vector<1x16xf32>, vector<16x32xf32>, vector<1x32xf32> -> vector<1x32xf32>
    %c0_25 = arith.constant 0 : index
    %c0_26 = arith.constant 0 : index
    %c0_27 = arith.constant 0 : index
    %33 = vector.load %arg10[%c0_25, %c0_26, %c0_27] : memref<1x1x32xf32, #tpu.memory_space<vmem>>, vector<1x1x32xf32>
    %34 = vector.shape_cast %33 : vector<1x1x32xf32> to vector<1x32xf32>
    %35 = vector.shape_cast %32 : vector<1x32xf32> to vector<1x1x32xf32>
    tpu.vector_store %arg10[%c0_25, %c0_26, %c0_27], %35 {strides = array<i32>} : memref<1x1x32xf32, #tpu.memory_space<vmem>>, vector<1x1x32xf32>,
    return
  }
  func.func @transform_0(%arg0: i32) -> (i32, i32, i32) {
    %c0_i32 = arith.constant 0 : i32
    %c0_i32_0 = arith.constant 0 : i32
    %c0_i32_1 = arith.constant 0 : i32
    return %arg0, %c0_i32, %c0_i32_0 : i32, i32, i32
  }
  func.func @transform_1(%arg0: i32) -> (i32, i32, i32) {
    %c0_i32 = arith.constant 0 : i32
    %c0_i32_0 = arith.constant 0 : i32
    %c0_i32_1 = arith.constant 0 : i32
    return %arg0, %c0_i32, %c0_i32_0 : i32, i32, i32
  }
  func.func @transform_2(%arg0: i32) -> (i32, i32, i32) {
    %c0_i32 = arith.constant 0 : i32
    %c0_i32_0 = arith.constant 0 : i32
    %c0_i32_1 = arith.constant 0 : i32
    return %arg0, %c0_i32, %c0_i32_0 : i32, i32, i32
  }
  func.func @transform_3(%arg0: i32) -> (i32, i32) {
    %c0_i32 = arith.constant 0 : i32
    %c0_i32_0 = arith.constant 0 : i32
    %c0_i32_1 = arith.constant 0 : i32
    return %c0_i32, %c0_i32_0 : i32, i32
  }
  func.func @transform_4(%arg0: i32) -> (i32, i32) {
    %c0_i32 = arith.constant 0 : i32
    %c0_i32_0 = arith.constant 0 : i32
    %c0_i32_1 = arith.constant 0 : i32
    return %c0_i32, %c0_i32_0 : i32, i32
  }
  func.func @transform_5(%arg0: i32) -> (i32, i32) {
    %c0_i32 = arith.constant 0 : i32
    %c0_i32_0 = arith.constant 0 : i32
    %c0_i32_1 = arith.constant 0 : i32
    return %c0_i32, %c0_i32_0 : i32, i32
  }
  func.func @transform_6(%arg0: i32) -> (i32, i32) {
    %c0_i32 = arith.constant 0 : i32
    %c0_i32_0 = arith.constant 0 : i32
    %c0_i32_1 = arith.constant 0 : i32
    return %c0_i32, %c0_i32_0 : i32, i32
  }
  func.func @transform_7(%arg0: i32) -> (i32, i32) {
    %c0_i32 = arith.constant 0 : i32
    %c0_i32_0 = arith.constant 0 : i32
    %c0_i32_1 = arith.constant 0 : i32
    return %c0_i32, %c0_i32_0 : i32, i32
  }
  func.func @transform_8(%arg0: i32) -> (i32, i32) {
    %c0_i32 = arith.constant 0 : i32
    %c0_i32_0 = arith.constant 0 : i32
    %c0_i32_1 = arith.constant 0 : i32
    return %c0_i32, %c0_i32_0 : i32, i32
  }
  func.func @transform_9(%arg0: i32) -> (i32, i32, i32) {
    %c0_i32 = arith.constant 0 : i32
    %c0_i32_0 = arith.constant 0 : i32
    %c0_i32_1 = arith.constant 0 : i32
    return %arg0, %c0_i32, %c0_i32_0 : i32, i32, i32
  }
}

</mosaic_0001>

<bundles_post_ra>
// kernel: tpu_custom_call.1
= control target key start
LH: loop header
LB: loop body
LE: loop exit
PB: predicated region body
PF: predicated region fallthrough
CT: control target
= control target key end

     0   :  { %s1217_s0 = inlined_call_operand.vmem [shape: f32[2,16,32], index: 0, kind: input, shape index: {}]   ;;  %s1218_s1 = inlined_call_operand.vmem [shape: f32[2,32,16], index: 1, kind: input, shape index: {}]   ;;  %s1219_s2 = inlined_call_operand.vmem [shape: f32[2,1,32], index: 2, kind: input, shape index: {}]   ;;  %s1220_s3 = inlined_call_operand.vmem [shape: f32[16,32], index: 3, kind: input, shape index: {}]   ;;  %s1221_s4 = inlined_call_operand.vmem [shape: f32[16,1], index: 4, kind: input, shape index: {}]   ;;  %s1222_s5 = inlined_call_operand.vmem [shape: f32[32,16], index: 5, kind: input, shape index: {}]   ;;  %s1223_s6 = inlined_call_operand.vmem [shape: f32[1,16], index: 6, kind: input, shape index: {}]   ;;  %s1224_s7 = inlined_call_operand.vmem [shape: f32[1,16], index: 7, kind: input, shape index: {}]   ;;  %s1225_s8 = inlined_call_operand.<no memory space> [shape: f32[1,1], index: 8, kind: input, shape index: {}]   ;;  %s1226_s9 = inlined_call_operand.hbm [shape: f32[2,1,32], index: 9, kind: output, shape index: {}]  }
   0x1   :  { %v14_v0 = vstv %s1225_s8 }
   0x2   :  { %15 = vst [vmem:[#allocation2] sm:$0x1] %v14_v0 }
   0x3   :  { %16 = vsyncpa [#allocation4], 0 }
   0x4   :  { %18 = vsyncpa [#allocation4 + $0x1], 0  ;;  %s1058_s11 = smov 0   ;;  %s1060_s12 = smov 0  }
   0x5   :  { %s1062_s13 = smov 0   ;;  %s1064_s14 = smov 0  }
   0x6 LB: > { %s1079_s8 = sadd.s32 4294967295, %s999_s14   ;;  %s816_s15 = sadd.s32 4294967294, %s999_s14   ;;  %s999_s14 = sphi %s1064_s14, %s1232_s14   ;;  %s995_s13 = sphi %s1062_s13, %s1231_s13   ;;  %s991_s12 = sphi %s1060_s12, %s1230_s12   ;;  %s987_s11 = sphi %s1058_s11, %s1229_s11  }
   0x7   : > { %s1083_s16 = sadd.s32 1, %s999_s14   ;;  %s235_s17 = sadd.s32 1, %s995_s13 }
   0x8   : > { %s232_s18 = ssub.s32 %s999_s14, %s1083_s16  ;;  %p245_p0 = scmp.ne.s32.totalorder %s995_s13, %s991_s12 }
   0x9   : > { %p233_p1 = scmp.eq.s32.totalorder %s232_s18, 0  ;;  %p246_p2 = scmp.eq.s32.totalorder %s1079_s8, 1 }
   0xa   : > { %p251_p3 = scmp.ne.s32.totalorder %s991_s12, %s987_s11  ;;  %p252_p4 = scmp.eq.s32.totalorder %s816_s15, 1 }
   0xb   : > { %s1094_s19 = scalar_select %p233_p1, %s995_s13, %s235_s17  }
   0xc   : > { %p1096_p5 = por %p246_p2, %p245_p0  ;;  %p1100_p6 = por %p252_p4, %p251_p3 }
   0xd   : > { %p819_p7 = scmp.ge.s32.totalorder %s999_s14, 1  ;;  %p310_p8 = scmp.lt.s32.totalorder %s999_s14, 3 }
   0xf   : > { %p311_p9 = pnand %p819_p7, %p310_p8 }
  0x10   : > { %p353_p10 = scmp.lt.s32.totalorder (!%p311_p9), %s1079_s8, 1  ;;  %s351_s30 = sand.u32 (!%p311_p9), 1, %s991_s12  }
  0x11   : > { %314 = sbr.rel (%p311_p9) target bundleno = 964 (0x3c4), region = 56  ;;  %s829_s10 = sshll.u32 (!%p311_p9), %s1079_s8, 4 }
  0x12   : > { %s1176_s22 = scalar_lea.hbm (!%p311_p9), %s1226_s9, %s829_s10 }
  0x16   : > { %v470_v1 = vld [vmem:[%s1222_s5 + $0x18] sm:$0xff]  ;;  %v1001_v2 = vmov 0.0   ;;  %v469_v3 = vld [vmem:[%s1222_s5 + $0x10] sm:$0xff]  ;;  %vm1002_vm0 = vmmov 0   ;;  %vm384_vm1 = vcmask 261120   ;;  %v366_v4 = vld [vmem:[%s1220_s3] sm:$0xff]  ;;  %v545_v17 = vlaneseq }
  0x17   : > { %862 = vmatprep.subr.mxu1 %v1001_v2  ;;  %870 = vmatprep.mubr.msk.f32.mxu1 %vm1002_vm0, %v1001_v2  ;;  %s1120_s28 = scalar_select %p353_p10, %s1079_s8, 1  ;;  %v373_v5 = vld [vmem:[%s1221_s4 + $0x8] sm:$0xff]  ;;  %v1003_v7 = vmov 0   ;;  %v467_v8 = vld [vmem:[%s1222_s5] sm:$0xff]  ;;  %vm564_vm2 = vcmask 130048   ;;  %vm638_vm3 = vcmask 122880  }
  0x18   : > { %863 = vmatpush3.msra.mxu1 %v470_v1  ;;  %859 = vmatprep.mubr.msk.f32.mxu0 %vm384_vm1, %v366_v4  ;;  %v468_v6 = vld [vmem:[%s1222_s5 + $0x8] sm:$0xff]  ;;  %v372_v12 = vld [vmem:[%s1221_s4] sm:$0xff]  ;;  %v546_v18 = vshrl.u32 %v545_v17, 7  ;;  %vm725_vm4 = vcmask 253952   ;;  %s1004_s8 = smov [#allocation3]  }
  0x19   : > { %864 = vmatprep.subr.mxu1 %v1001_v2  ;;  %929 = vset.pattern.permute.xlu0 %v1003_v7  ;;  %s833_s17 = sshll.u32 %s1120_s28, 5  ;;  %s365_s23 = scalar_lea.vmem %s1219_s2, %s1120_s28  ;;  %v367_v15 = vld [vmem:[%s1220_s3 + $0x8] sm:$0xff]  ;;  %v554_v16 = vld [vmem:[#allocation2] sm:$0x1] }
  0x1a   : > { %865 = vmatpush3.msra.mxu1 %v469_v3  ;;  %381 = vperm.xlu0 %929, %v373_v5   ;;  %s362_s26 = scalar_lea.vmem %s1218_s1, %s833_s17  ;;  %v466_v11 = vld [vmem:[%s365_s23] sm:$0x1]  ;;  %v547_v22 = vsub.s32 0, %v546_v18  ;;  %s832_s25 = sshll.u32 %s1120_s28, 4 }
  0x1b   : > { %866 = vmatprep.subr.mxu1 %v1001_v2  ;;  %930 = vset.pattern.permute.xlu1 %v1003_v7  ;;  %v371_v9 = vld [vmem:[%s362_s26 + $0x18] sm:$0xff]  ;;  %v370_v10 = vld [vmem:[%s362_s26 + $0x10] sm:$0xff]  ;;  %v369_v13 = vld [vmem:[%s362_s26 + $0x8] sm:$0xff]  ;;  %s357_s29 = scalar_lea.vmem %s1217_s0, %s832_s25  ;;  %s352_s28 = scalar_lea.vmem [#allocation3], %s351_s30 }
  0x1c   : > { %867 = vmatpush3.msra.mxu1 %v468_v6  ;;  %851 = vmatprep.subr.mxu0 %v371_v9  ;;  %v368_v14 = vld [vmem:[%s362_s26] sm:$0xff]  ;;  %v651_v47 = vld [vmem:[%s357_s29 + $0x8] sm:$0xff]  ;;  %s740_s15 = sshll.u32 %s352_s28, 4  ;;  %s728_s23 = scalar_lea.sflag [#allocation4], %s351_s30  ;;  %s1178_s15 = int_to_ptr.vmem [resolvable:$true] %s740_s15 }
  0x1d   : > { %868 = vmatprep.subr.mxu1 %v1001_v2  ;;  %852 = vmatpush3.msra.mxu0 %v371_v9  ;;  %v471_v19 = vld [vmem:[%s1223_s6] sm:$0x1]  ;;  %s939_s24 = scalar_lea.vmem %s1178_s15, 16  ;;  %s943_s25 = sshll.u32 %s1004_s8, 4  ;;  %s944_s25 = int_to_ptr.vmem [resolvable:$false] %s943_s25 }
  0x1e   : > { %869 = vmatpush3.msra.mxu1 %v467_v8  ;;  %853 = vmatprep.subr.mxu0 %v370_v10  ;;  %v553_v34 = vld [vmem:[%s1224_s7] sm:$0x1]  ;;  %p940_p11 = scmp.ne.s32.totalorder %s1178_s15, %s939_s24  ;;  %s945_s26 = scalar_lea.vmem %s944_s25, 32 }
  0x1f   : > { %871 = vmatmul.mubr.msk.f32.vlgmr.msra.gmra.mxu1 %vm384_vm1, %v466_v11  ;;  %854 = vmatpush3.msra.mxu0 %v370_v10  ;;  %v650_v48 = vld [vmem:[%s357_s29] sm:$0xff]  ;;  %p946_p0 = scmp.lt.s32.totalorder %s1178_s15, %s944_s25  ;;  %p947_p1 = scmp.lt.s32.totalorder %s945_s26, %s939_s24 }
  0x20   : > { %376 = vperm.xlu0 %929, %v372_v12   ;;  %855 = vmatprep.subr.mxu0 %v369_v13  ;;  %p941_p12 = pnand %p940_p11, %p1096_p5 }
  0x21   : > { %880 = vmatprep.subr.mxu1 %v1001_v2  ;;  %856 = vmatpush3.msra.mxu0 %v369_v13  ;;  %p948_p2 = por %p947_p1, %p946_p0 }
  0x22   : > { %884 = vmatprep.mubr.msk.f32.mxu1 %vm1002_vm0, %v1001_v2  ;;  %857 = vmatprep.subr.mxu0 %v368_v14  ;;  %p942_p13 = pneg %p941_p12 }
  0x23   : > { %858 = vmatpush3.msra.mxu0 %v368_v14  ;;  %557 = vperm.xlu1 %930, %v554_v16  }
  0x24   : > { %860 = vmatmul.mubr.msk.f32.vlgmr.msra.gmra.mxu0 %vm384_vm1, %v367_v15  ;;  %873 = vmatprep.subr.mxu0 %v1001_v2  ;;  %p949_p3 = pnand %p948_p2, %p942_p13 }
  0x25   : > { %877 = vmatprep.mubr.msk.f32.mxu0 %vm1002_vm0, %v1001_v2  ;;  %881 = vmatpush3.msra.mxu1 %v651_v47 }
  0x26   : > { %882 = vmatprep.subr.mxu1 %v1001_v2 }
  0x27   : > { %883 = vmatpush3.msra.mxu1 %v650_v48 }
  0x95   : > { %v382_v23 = vpop.permute.xlu0 %381 }
  0x9b   : > { %v377_v28 = vpop.permute.xlu0 %376 }
  0x9e   : > { %v558_v36 = vpop.permute.xlu1 %557 }
  0x9f   : > { %v563_v37 = vrot.slane %v558_v36, %v547_v22 }
  0xdf   : > { %v541_v20 = vpop.f32.mrf.mxu1 }
  0xe0   : > { %v542_v21 = vadd.f32 %v541_v20, %v471_v19 }
  0xe1   : > { %v872_v24 = vpop.f32.mrf.mxu1 }
  0xe2   : > { %v548_v25 = vrot.slane %v542_v21, %v547_v22 }
  0xe4   : > { %v861_v26 = vpop.f32.mrf.mxu0 }
  0xe5   : > { %v463_v27 = vadd.f32 %v861_v26, %v382_v23 }
  0xe6   : > { %v457_v29 = vpop.f32.mrf.mxu0 }
  0xe7   : > { %v550_v30 = vadd.f32 %v548_v25, %v463_v27  ;;  %v458_v31 = vadd.f32 %v457_v29, %v377_v28 }
  0xe9   : > { %931 = vtanh.f32 %v550_v30  ;;  %v549_v32 = vadd.f32 %v548_v25, %v458_v31 }
  0xeb   : > { %933 = vtanh.f32 %v549_v32 }
  0xf6   : > { %v932_v33 = vpop.eup %931 }
  0xf7   : > { %874 = vmatpush3.msra.mxu0 %v932_v33 }
  0xf8   : > { %v934_v35 = vpop.eup %933  ;;  %875 = vmatprep.subr.mxu0 %v1001_v2 }
  0xf9   : > { %876 = vmatpush3.msra.mxu0 %v934_v35 }
  0xfa   : > { %878 = vmatmul.mubr.msk.f32.vlgmr.msra.gmra.mxu0 %vm564_vm2, %v553_v34 }
 0x1ba   : > { %v634_v38 = vpop.f32.mrf.mxu0 }
 0x1bb   : > { %v635_v39 = vadd.f32 %v634_v38, %v563_v37 }
 0x1bc   : > { %v879_v40 = vpop.f32.mrf.mxu0 }
 0x1bd   : > { %v639_v41 = vsel %vm638_vm3, %v635_v39, -inf }
 0x1be   : > { %640 = vmax.xlane.f32.xlu1 %v639_v41 }
 0x247   : > { %v641_v42 = vpop.xlane.xlu1 %640 }
 0x248   : > { %v642_v43 = vsub.f32 %v635_v39, %v641_v42 }
 0x24a   : > { %v643_v44 = vmul.f32 1.442695, %v642_v43 }
 0x24c   : > { %935 = vpow2.f32 %v643_v44 }
 0x259   : > { %v936_v45 = vpop.eup %935 }
 0x25a   : > { %v645_v46 = vsel %vm638_vm3, %v936_v45, 0.0 }
 0x25b   : > { %646 = vadd.xlane.f32.xlu0 %v645_v46 }
 0x2e4   : > { %v647_v49 = vpop.xlane.xlu0 %646 }
 0x2e5   : > { %937 = vrcp.f32 %v647_v49 }
 0x2f2   : > { %v938_v50 = vpop.eup %937 }
 0x2f3   : > { %v649_v51 = vmul.f32 %v938_v50, %v936_v45 }
 0x2f5   : > { %885 = vmatmul.mubr.msk.f32.vlgmr.msra.gmra.mxu1 %vm564_vm2, %v649_v51 }
 0x3b5   : > { %v721_v52 = vpop.f32.mrf.mxu1 }
 0x3b6   : > { %726 = vst.msk [vmem:[%s352_s28] sm:$0x1] %vm725_vm4, %v721_v52 }
 0x3b7   : > { %v886_v53 = vpop.f32.mrf.mxu1 }
 0x3b8   : > { %952 = shalt.err (!%p949_p3)
}
 0x3b9   : > { %s953_s27 = scalar_lea.hbm %s1176_s22, 16  ;;  %s957_s10 = scalar_lea.hbm %s1226_s9, 32 }
 0x3ba   : > { %p954_p4 = scmp.ne.s32.totalorder %s1176_s22, %s953_s27  ;;  %p958_p9 = scmp.lt.s32.totalorder %s1176_s22, %s1226_s9 }
 0x3bb   : > { %p959_p10 = scmp.lt.s32.totalorder %s957_s10, %s953_s27 }
 0x3bc   : > { %p955_p7 = pnand %p954_p4, %p1096_p5 }
 0x3bd   : > { %p960_p11 = por %p959_p10, %p958_p9 }
 0x3be   : > { %p956_p8 = pneg %p955_p7 }
 0x3c0   : > { %p961_p12 = pnand %p960_p11, %p956_p8 }
 0x3c2   : > { %964 = shalt.err (!%p961_p12)
}
 0x3c3   : > { %887 = dma.vmem_to_hbm [thread:$0]  (%p1096_p5), %s1178_s15, 16, %s1176_s22, %s728_s23  }
 0x3c4 PF: > { %p893_p13 = scmp.ge.s32.totalorder %s999_s14, 2  ;;  %s752_s18 = sand.u32 1, %s987_s11  }
 0x3c5   : > { %s753_s24 = scalar_lea.sflag [#allocation4], %s752_s18 }
 0x3c6   : > { %p890_p0 = pnand %p893_p13, %p1100_p6 }
 0x3c8   : > { %p891_p1 = pneg %p890_p0 }
 0x3ca   : > { %982 = dma.done.wait (%p891_p1), %s753_s24, 16  }
 0x3cb   : > { %984 = vsyncadd (%p891_p1), %s753_s24, 4294967280  ;;  %p21_p2 = scmp.ge.s32.totalorder %s1083_s16, 4   ;;  %s1229_s11 = smov %s991_s12 }
 0x3cc   : > { %s1230_s12 = smov %s995_s13  ;;  %s1231_s13 = smov %s1094_s19 }
 0x3cd   : > { %s1232_s14 = smov %s1083_s16  ;;  %23 = sbr.rel (!%p21_p2) target bundleno = 6 (0x6), region = 97 }
 0x3d2   :  { %757 = vsyncpa [#allocation4], 1 }
 0x3d3   :  { %759 = vsyncpa [#allocation4 + $0x1], 1 }

</bundles_post_ra>
